<compile_context>
chip_gen: v5e
topology: v5e:2x2
jax: 0.10.0
libtpu: 0.0.40
codegen_flags: <defaults>
</compile_context>

<pallas_src>
import functools

import jax
import jax.numpy as jnp
import numpy as np
from jax.experimental import pallas as pl
from jax.experimental.pallas import tpu as pltpu


def _round_up(v, m):
    return -(-v // m) * m


def _fit_dim(arr, size, axis):
    """Zero-pad or slice `arr` along `axis` so its extent is exactly `size`."""
    cur = arr.shape[axis]
    if cur < size:
        pads = [(0, 0)] * arr.ndim
        pads[axis] = (0, size - cur)
        return jnp.pad(arr, pads)
    if cur > size:
        return jax.lax.slice_in_dim(arr, 0, size, axis=axis)
    return arr


def _conv_maxpool_kernel(xp_ref, w_ref, b_ref, out_ref, *, pk, kh, kw, wq, mpad):
    # xp_ref : [1, pk*pk, Cin, L]  pool-phase split of x, spatial flattened (compute dtype)
    # w_ref  : [Cout, K]           weight, k-order = (i, j, cin)
    # b_ref  : [Cout, 1]           bias (f32)
    # out_ref: [1, Cout, Mpad]     pooled output, flat (Po, Wq) spatial, lane-padded to 128
    w = w_ref[...]
    acc = None
    # G = pk*pk pool-window offsets, fully unrolled; max folded on the fly.
    for qi in range(pk):
        for qj in range(pk):
            # Build the [K, Mpad] contraction operand in VMEM from static shifted
            # lane slices of the phase-split input (no HBM im2col).
            pieces = []
            for i in range(kh):
                for j in range(kw):
                    di, dj = qi + i, qj + j
                    plane = (di % pk) * pk + (dj % pk)   # which pool-phase plane
                    off = (di // pk) * wq + (dj // pk)   # static lane offset
                    pieces.append(xp_ref[0, plane, :, off:off + mpad])
            patches = jnp.concatenate(pieces, axis=0)    # [K, Mpad]
            r = jnp.dot(w, patches, preferred_element_type=jnp.float32)
            acc = r if acc is None else jnp.maximum(acc, r)
    # NOTE: acc is [Cout, Mpad] f32 live across the G-fold; for very large Cout*Mpad
    # fold over 512-lane sub-chunks instead to avoid vreg spills.
    out_ref[0] = (acc + b_ref[...]).astype(out_ref.dtype)


def conv_maxpool(x, weight, bias, pool_ker,
                 compute_dtype=jnp.bfloat16, out_dtype=jnp.float32):
    """x: [B, Cin, H, W]; weight: [Cout, Cin, kh, kw]; bias: [Cout] -> [B, Cout, Po, Pw]."""
    B, Cin, H, W = x.shape
    Cout, _, kh, kw = weight.shape
    pk = int(pool_ker)
    Ho, Wo = H - kh + 1, W - kw + 1          # valid conv, stride 1 (PyTorch default)
    Po, Pw = Ho // pk, Wo // pk              # MaxPool2d default: stride=kernel, floor
    K = Cin * kh * kw
    G = pk * pk

    # Largest (row, col) shift, in pooled-grid units, needed by any (pool, kernel) offset.
    d_max = (pk - 1 + kh - 1) // pk
    e_max = (pk - 1 + kw - 1) // pk

    # Pooled-grid width used for flat indexing; >= Pw + e_max so valid columns never
    # wrap rows. Columns [Pw, Wq) are computed as garbage and sliced off afterwards.
    Wq = Pw + e_max
    # Flat pooled spatial dim, padded to a lane-dense multiple of 128 (garbage rows).
    Mpad = _round_up(Po * Wq, 128)
    # Phase-plane flat length: must cover every access m + d*Wq + e for m < Mpad.
    Hq = -(-(Mpad + d_max * Wq + e_max) // Wq)
    L = Hq * Wq

    # ---- pool-phase split of x (space-to-depth); same size as x, no kh*kw blowup ----
    # xp[b, a*pk+c, ci, u*Wq+v] = x[b, ci, u*pk+a, v*pk+c]   (zero-padded out of range)
    xq = _fit_dim(_fit_dim(x, Hq * pk, 2), Wq * pk, 3)
    xp = (xq.reshape(B, Cin, Hq, pk, Wq, pk)
             .transpose(0, 3, 5, 1, 2, 4)                  # [B, pk, pk, Cin, Hq, Wq]
             .reshape(B, G, Cin, L)
             .astype(compute_dtype))

    # Weight with k-order (i, j, cin) to match the in-kernel patch concatenation.
    w2 = weight.transpose(0, 2, 3, 1).reshape(Cout, K).astype(compute_dtype)
    b2 = bias.reshape(Cout, 1).astype(jnp.float32)

    # ---- generation-aware VMEM limit -------------------------------------------------
    isz = jnp.dtype(compute_dtype).itemsize
    osz = jnp.dtype(out_dtype).itemsize
    vmem_est = (2 * G * Cin * L * isz            # double-buffered input block
                + 2 * Cout * K * isz + 2 * Cout * 4
                + 2 * Cout * Mpad * osz
                + (4 << 20))                     # compiler scratch headroom
    try:
        vmem_cap = int(pltpu.get_tpu_info().vmem_capacity_bytes)
    except Exception:
        vmem_cap = 64 * 1024 * 1024              # v7x per-TensorCore size (safe floor)
    vmem_limit = int(min(max(vmem_est, 32 * 1024 * 1024), (vmem_cap * 3) // 4))

    kernel = functools.partial(_conv_maxpool_kernel,
                               pk=pk, kh=kh, kw=kw, wq=Wq, mpad=Mpad)

    out = pl.pallas_call(
        kernel,
        out_shape=jax.ShapeDtypeStruct((B, Cout, Mpad), out_dtype),
        grid_spec=pltpu.PrefetchScalarGridSpec(
            num_scalar_prefetch=0,
            grid=(B,),
            in_specs=[
                pl.BlockSpec((1, G, Cin, L), lambda b: (b, 0, 0, 0)),
                pl.BlockSpec((Cout, K), lambda b: (0, 0)),   # weight stays VMEM-resident
                pl.BlockSpec((Cout, 1), lambda b: (0, 0)),
            ],
            out_specs=pl.BlockSpec((1, Cout, Mpad), lambda b: (b, 0, 0)),
        ),
        compiler_params=pltpu.CompilerParams(
            dimension_semantics=("parallel",),
            vmem_limit_bytes=vmem_limit),
    )(xp, w2, b2)

    # Drop garbage rows/columns, restore [B, Cout, Po, Pw] (already NCHW, no transpose).
    out = out[:, :, :Po * Wq].reshape(B, Cout, Po, Wq)[:, :, :, :Pw]
    return out


if __name__ == "__main__":
    # Small, deterministic config consistent with the module's __init__.
    B, Cin, Cout = 2, 4, 8
    H = W = 16
    conv_ker, pool_ker = 3, 2

    key = jax.random.PRNGKey(0)
    kx, kw_, kb = jax.random.split(key, 3)

    x = jax.random.normal(kx, (B, Cin, H, W), dtype=jnp.float32)
    # Deterministic, PyTorch-like uniform(-1/sqrt(fan_in), 1/sqrt(fan_in)) init.
    fan_in = Cin * conv_ker * conv_ker
    bound = 1.0 / np.sqrt(fan_in)
    weight = jax.random.uniform(kw_, (Cout, Cin, conv_ker, conv_ker),
                                minval=-bound, maxval=bound, dtype=jnp.float32)
    bias = jax.random.uniform(kb, (Cout,), minval=-bound, maxval=bound,
                              dtype=jnp.float32)

    # Plain-JAX reference (conv NCHW/OIHW valid + max-pool) to verify semantics.
    conv_ref = jax.lax.conv_general_dilated(
        x, weight, window_strides=(1, 1), padding="VALID",
        dimension_numbers=("NCHW", "OIHW", "NCHW")) + bias.reshape(1, -1, 1, 1)
    pool_ref = jax.lax.reduce_window(
        conv_ref, -jnp.inf, jax.lax.max,
        window_dimensions=(1, 1, pool_ker, pool_ker),
        window_strides=(1, 1, pool_ker, pool_ker), padding="VALID")

    # Default path: bf16 input/weight streams, f32 accumulation -> loose tolerance.
    y = jax.block_until_ready(conv_maxpool(x, weight, bias, pool_ker))
    assert y.shape == pool_ref.shape, (y.shape, pool_ref.shape)
    np.testing.assert_allclose(np.asarray(y), np.asarray(pool_ref),
                               rtol=3e-2, atol=3e-2)

    # Full-f32 path: tight check of the kernel structure / indexing.
    y32 = jax.block_until_ready(
        conv_maxpool(x, weight, bias, pool_ker, compute_dtype=jnp.float32))
    np.testing.assert_allclose(np.asarray(y32), np.asarray(pool_ref),
                               rtol=1e-5, atol=1e-5)

    print("KERNEL_OK")
</pallas_src>

<mosaic_0001>
module attributes {stable_mosaic.version = 11 : i64} {
  func.func @_conv_maxpool_kernel(%arg0: i32, %arg1: memref<1x4x4x144xbf16, #tpu.memory_space<vmem>>, %arg2: memref<8x36xbf16, #tpu.memory_space<vmem>>, %arg3: memref<8x1xf32, #tpu.memory_space<vmem>>, %arg4: memref<1x8x128xf32, #tpu.memory_space<vmem>>) attributes {dimension_semantics = [#tpu.dimension_semantics<parallel>], iteration_bounds = array<i64: 2>, scalar_prefetch = 0 : i64, scratch_operands = 0 : i64, tpu.core_type = #tpu.core_type<tc>, window_params = [{transform_indices = @transform_0, window_bounds = array<i64: 1, 4, 4, 144>}, {pipeline_mode = #tpu.pipeline_mode<synchronous>, transform_indices = @transform_1, window_bounds = array<i64: 8, 36>}, {pipeline_mode = #tpu.pipeline_mode<synchronous>, transform_indices = @transform_2, window_bounds = array<i64: 8, 1>}, {transform_indices = @transform_3, window_bounds = array<i64: 1, 8, 128>}]} {
    %c0 = arith.constant 0 : index
    %c0_0 = arith.constant 0 : index
    %0 = vector.load %arg2[%c0, %c0_0] : memref<8x36xbf16, #tpu.memory_space<vmem>>, vector<8x36xbf16>
    %c0_1 = arith.constant 0 : index
    %c0_2 = arith.constant 0 : index
    %c0_3 = arith.constant 0 : index
    %c0_4 = arith.constant 0 : index
    %1 = vector.load %arg1[%c0_1, %c0_2, %c0_3, %c0_4] : memref<1x4x4x144xbf16, #tpu.memory_space<vmem>>, vector<1x1x4x128xbf16>
    %2 = vector.shape_cast %1 : vector<1x1x4x128xbf16> to vector<4x128xbf16>
    %c0_5 = arith.constant 0 : index
    %c1 = arith.constant 1 : index
    %c0_6 = arith.constant 0 : index
    %c0_7 = arith.constant 0 : index
    %3 = vector.load %arg1[%c0_5, %c1, %c0_6, %c0_7] : memref<1x4x4x144xbf16, #tpu.memory_space<vmem>>, vector<1x1x4x128xbf16>
    %4 = vector.shape_cast %3 : vector<1x1x4x128xbf16> to vector<4x128xbf16>
    %c0_8 = arith.constant 0 : index
    %c0_9 = arith.constant 0 : index
    %c0_10 = arith.constant 0 : index
    %c1_11 = arith.constant 1 : index
    %5 = vector.load %arg1[%c0_8, %c0_9, %c0_10, %c1_11] : memref<1x4x4x144xbf16, #tpu.memory_space<vmem>>, vector<1x1x4x128xbf16>
    %6 = vector.shape_cast %5 : vector<1x1x4x128xbf16> to vector<4x128xbf16>
    %c0_12 = arith.constant 0 : index
    %c2 = arith.constant 2 : index
    %c0_13 = arith.constant 0 : index
    %c0_14 = arith.constant 0 : index
    %7 = vector.load %arg1[%c0_12, %c2, %c0_13, %c0_14] : memref<1x4x4x144xbf16, #tpu.memory_space<vmem>>, vector<1x1x4x128xbf16>
    %8 = vector.shape_cast %7 : vector<1x1x4x128xbf16> to vector<4x128xbf16>
    %c0_15 = arith.constant 0 : index
    %c3 = arith.constant 3 : index
    %c0_16 = arith.constant 0 : index
    %c0_17 = arith.constant 0 : index
    %9 = vector.load %arg1[%c0_15, %c3, %c0_16, %c0_17] : memref<1x4x4x144xbf16, #tpu.memory_space<vmem>>, vector<1x1x4x128xbf16>
    %10 = vector.shape_cast %9 : vector<1x1x4x128xbf16> to vector<4x128xbf16>
    %c0_18 = arith.constant 0 : index
    %c2_19 = arith.constant 2 : index
    %c0_20 = arith.constant 0 : index
    %c1_21 = arith.constant 1 : index
    %11 = vector.load %arg1[%c0_18, %c2_19, %c0_20, %c1_21] : memref<1x4x4x144xbf16, #tpu.memory_space<vmem>>, vector<1x1x4x128xbf16>
    %12 = vector.shape_cast %11 : vector<1x1x4x128xbf16> to vector<4x128xbf16>
    %c0_22 = arith.constant 0 : index
    %c0_23 = arith.constant 0 : index
    %c0_24 = arith.constant 0 : index
    %c8 = arith.constant 8 : index
    %13 = vector.load %arg1[%c0_22, %c0_23, %c0_24, %c8] : memref<1x4x4x144xbf16, #tpu.memory_space<vmem>>, vector<1x1x4x128xbf16>
    %14 = vector.shape_cast %13 : vector<1x1x4x128xbf16> to vector<4x128xbf16>
    %c0_25 = arith.constant 0 : index
    %c1_26 = arith.constant 1 : index
    %c0_27 = arith.constant 0 : index
    %c8_28 = arith.constant 8 : index
    %15 = vector.load %arg1[%c0_25, %c1_26, %c0_27, %c8_28] : memref<1x4x4x144xbf16, #tpu.memory_space<vmem>>, vector<1x1x4x128xbf16>
    %16 = vector.shape_cast %15 : vector<1x1x4x128xbf16> to vector<4x128xbf16>
    %c0_29 = arith.constant 0 : index
    %c0_30 = arith.constant 0 : index
    %c0_31 = arith.constant 0 : index
    %c9 = arith.constant 9 : index
    %17 = vector.load %arg1[%c0_29, %c0_30, %c0_31, %c9] : memref<1x4x4x144xbf16, #tpu.memory_space<vmem>>, vector<1x1x4x128xbf16>
    %18 = vector.shape_cast %17 : vector<1x1x4x128xbf16> to vector<4x128xbf16>
    %19 = tpu.concatenate %2, %4, %6, %8, %10, %12, %14, %16, %18 in 0 : vector<4x128xbf16>, vector<4x128xbf16>, vector<4x128xbf16>, vector<4x128xbf16>, vector<4x128xbf16>, vector<4x128xbf16>, vector<4x128xbf16>, vector<4x128xbf16>, vector<4x128xbf16> -> vector<36x128xbf16>
    %cst = arith.constant dense<0.000000e+00> : vector<8x128xf32>
    %20 = tpu.matmul %0, %19, %cst {dimension_numbers = #tpu.dot_dimension_numbers<[1], [0], [0], [1], [0, 0, 1, 1], [], []>} : vector<8x36xbf16>, vector<36x128xbf16>, vector<8x128xf32> -> vector<8x128xf32>
    %c0_32 = arith.constant 0 : index
    %c1_33 = arith.constant 1 : index
    %c0_34 = arith.constant 0 : index
    %c0_35 = arith.constant 0 : index
    %21 = vector.load %arg1[%c0_32, %c1_33, %c0_34, %c0_35] : memref<1x4x4x144xbf16, #tpu.memory_space<vmem>>, vector<1x1x4x128xbf16>
    %22 = vector.shape_cast %21 : vector<1x1x4x128xbf16> to vector<4x128xbf16>
    %c0_36 = arith.constant 0 : index
    %c0_37 = arith.constant 0 : index
    %c0_38 = arith.constant 0 : index
    %c1_39 = arith.constant 1 : index
    %23 = vector.load %arg1[%c0_36, %c0_37, %c0_38, %c1_39] : memref<1x4x4x144xbf16, #tpu.memory_space<vmem>>, vector<1x1x4x128xbf16>
    %24 = vector.shape_cast %23 : vector<1x1x4x128xbf16> to vector<4x128xbf16>
    %c0_40 = arith.constant 0 : index
    %c1_41 = arith.constant 1 : index
    %c0_42 = arith.constant 0 : index
    %c1_43 = arith.constant 1 : index
    %25 = vector.load %arg1[%c0_40, %c1_41, %c0_42, %c1_43] : memref<1x4x4x144xbf16, #tpu.memory_space<vmem>>, vector<1x1x4x128xbf16>
    %26 = vector.shape_cast %25 : vector<1x1x4x128xbf16> to vector<4x128xbf16>
    %c0_44 = arith.constant 0 : index
    %c3_45 = arith.constant 3 : index
    %c0_46 = arith.constant 0 : index
    %c0_47 = arith.constant 0 : index
    %27 = vector.load %arg1[%c0_44, %c3_45, %c0_46, %c0_47] : memref<1x4x4x144xbf16, #tpu.memory_space<vmem>>, vector<1x1x4x128xbf16>
    %28 = vector.shape_cast %27 : vector<1x1x4x128xbf16> to vector<4x128xbf16>
    %c0_48 = arith.constant 0 : index
    %c2_49 = arith.constant 2 : index
    %c0_50 = arith.constant 0 : index
    %c1_51 = arith.constant 1 : index
    %29 = vector.load %arg1[%c0_48, %c2_49, %c0_50, %c1_51] : memref<1x4x4x144xbf16, #tpu.memory_space<vmem>>, vector<1x1x4x128xbf16>
    %30 = vector.shape_cast %29 : vector<1x1x4x128xbf16> to vector<4x128xbf16>
    %c0_52 = arith.constant 0 : index
    %c3_53 = arith.constant 3 : index
    %c0_54 = arith.constant 0 : index
    %c1_55 = arith.constant 1 : index
    %31 = vector.load %arg1[%c0_52, %c3_53, %c0_54, %c1_55] : memref<1x4x4x144xbf16, #tpu.memory_space<vmem>>, vector<1x1x4x128xbf16>
    %32 = vector.shape_cast %31 : vector<1x1x4x128xbf16> to vector<4x128xbf16>
    %c0_56 = arith.constant 0 : index
    %c1_57 = arith.constant 1 : index
    %c0_58 = arith.constant 0 : index
    %c8_59 = arith.constant 8 : index
    %33 = vector.load %arg1[%c0_56, %c1_57, %c0_58, %c8_59] : memref<1x4x4x144xbf16, #tpu.memory_space<vmem>>, vector<1x1x4x128xbf16>
    %34 = vector.shape_cast %33 : vector<1x1x4x128xbf16> to vector<4x128xbf16>
    %c0_60 = arith.constant 0 : index
    %c0_61 = arith.constant 0 : index
    %c0_62 = arith.constant 0 : index
    %c9_63 = arith.constant 9 : index
    %35 = vector.load %arg1[%c0_60, %c0_61, %c0_62, %c9_63] : memref<1x4x4x144xbf16, #tpu.memory_space<vmem>>, vector<1x1x4x128xbf16>
    %36 = vector.shape_cast %35 : vector<1x1x4x128xbf16> to vector<4x128xbf16>
    %c0_64 = arith.constant 0 : index
    %c1_65 = arith.constant 1 : index
    %c0_66 = arith.constant 0 : index
    %c9_67 = arith.constant 9 : index
    %37 = vector.load %arg1[%c0_64, %c1_65, %c0_66, %c9_67] : memref<1x4x4x144xbf16, #tpu.memory_space<vmem>>, vector<1x1x4x128xbf16>
    %38 = vector.shape_cast %37 : vector<1x1x4x128xbf16> to vector<4x128xbf16>
    %39 = tpu.concatenate %22, %24, %26, %28, %30, %32, %34, %36, %38 in 0 : vector<4x128xbf16>, vector<4x128xbf16>, vector<4x128xbf16>, vector<4x128xbf16>, vector<4x128xbf16>, vector<4x128xbf16>, vector<4x128xbf16>, vector<4x128xbf16>, vector<4x128xbf16> -> vector<36x128xbf16>
    %cst_68 = arith.constant dense<0.000000e+00> : vector<8x128xf32>
    %40 = tpu.matmul %0, %39, %cst_68 {dimension_numbers = #tpu.dot_dimension_numbers<[1], [0], [0], [1], [0, 0, 1, 1], [], []>} : vector<8x36xbf16>, vector<36x128xbf16>, vector<8x128xf32> -> vector<8x128xf32>
    %41 = arith.maximumf %20, %40 : vector<8x128xf32>
    %c0_69 = arith.constant 0 : index
    %c2_70 = arith.constant 2 : index
    %c0_71 = arith.constant 0 : index
    %c0_72 = arith.constant 0 : index
    %42 = vector.load %arg1[%c0_69, %c2_70, %c0_71, %c0_72] : memref<1x4x4x144xbf16, #tpu.memory_space<vmem>>, vector<1x1x4x128xbf16>
    %43 = vector.shape_cast %42 : vector<1x1x4x128xbf16> to vector<4x128xbf16>
    %c0_73 = arith.constant 0 : index
    %c3_74 = arith.constant 3 : index
    %c0_75 = arith.constant 0 : index
    %c0_76 = arith.constant 0 : index
    %44 = vector.load %arg1[%c0_73, %c3_74, %c0_75, %c0_76] : memref<1x4x4x144xbf16, #tpu.memory_space<vmem>>, vector<1x1x4x128xbf16>
    %45 = vector.shape_cast %44 : vector<1x1x4x128xbf16> to vector<4x128xbf16>
    %c0_77 = arith.constant 0 : index
    %c2_78 = arith.constant 2 : index
    %c0_79 = arith.constant 0 : index
    %c1_80 = arith.constant 1 : index
    %46 = vector.load %arg1[%c0_77, %c2_78, %c0_79, %c1_80] : memref<1x4x4x144xbf16, #tpu.memory_space<vmem>>, vector<1x1x4x128xbf16>
    %47 = vector.shape_cast %46 : vector<1x1x4x128xbf16> to vector<4x128xbf16>
    %c0_81 = arith.constant 0 : index
    %c0_82 = arith.constant 0 : index
    %c0_83 = arith.constant 0 : index
    %c8_84 = arith.constant 8 : index
    %48 = vector.load %arg1[%c0_81, %c0_82, %c0_83, %c8_84] : memref<1x4x4x144xbf16, #tpu.memory_space<vmem>>, vector<1x1x4x128xbf16>
    %49 = vector.shape_cast %48 : vector<1x1x4x128xbf16> to vector<4x128xbf16>
    %c0_85 = arith.constant 0 : index
    %c1_86 = arith.constant 1 : index
    %c0_87 = arith.constant 0 : index
    %c8_88 = arith.constant 8 : index
    %50 = vector.load %arg1[%c0_85, %c1_86, %c0_87, %c8_88] : memref<1x4x4x144xbf16, #tpu.memory_space<vmem>>, vector<1x1x4x128xbf16>
    %51 = vector.shape_cast %50 : vector<1x1x4x128xbf16> to vector<4x128xbf16>
    %c0_89 = arith.constant 0 : index
    %c0_90 = arith.constant 0 : index
    %c0_91 = arith.constant 0 : index
    %c9_92 = arith.constant 9 : index
    %52 = vector.load %arg1[%c0_89, %c0_90, %c0_91, %c9_92] : memref<1x4x4x144xbf16, #tpu.memory_space<vmem>>, vector<1x1x4x128xbf16>
    %53 = vector.shape_cast %52 : vector<1x1x4x128xbf16> to vector<4x128xbf16>
    %c0_93 = arith.constant 0 : index
    %c2_94 = arith.constant 2 : index
    %c0_95 = arith.constant 0 : index
    %c8_96 = arith.constant 8 : index
    %54 = vector.load %arg1[%c0_93, %c2_94, %c0_95, %c8_96] : memref<1x4x4x144xbf16, #tpu.memory_space<vmem>>, vector<1x1x4x128xbf16>
    %55 = vector.shape_cast %54 : vector<1x1x4x128xbf16> to vector<4x128xbf16>
    %c0_97 = arith.constant 0 : index
    %c3_98 = arith.constant 3 : index
    %c0_99 = arith.constant 0 : index
    %c8_100 = arith.constant 8 : index
    %56 = vector.load %arg1[%c0_97, %c3_98, %c0_99, %c8_100] : memref<1x4x4x144xbf16, #tpu.memory_space<vmem>>, vector<1x1x4x128xbf16>
    %57 = vector.shape_cast %56 : vector<1x1x4x128xbf16> to vector<4x128xbf16>
    %c0_101 = arith.constant 0 : index
    %c2_102 = arith.constant 2 : index
    %c0_103 = arith.constant 0 : index
    %c9_104 = arith.constant 9 : index
    %58 = vector.load %arg1[%c0_101, %c2_102, %c0_103, %c9_104] : memref<1x4x4x144xbf16, #tpu.memory_space<vmem>>, vector<1x1x4x128xbf16>
    %59 = vector.shape_cast %58 : vector<1x1x4x128xbf16> to vector<4x128xbf16>
    %60 = tpu.concatenate %43, %45, %47, %49, %51, %53, %55, %57, %59 in 0 : vector<4x128xbf16>, vector<4x128xbf16>, vector<4x128xbf16>, vector<4x128xbf16>, vector<4x128xbf16>, vector<4x128xbf16>, vector<4x128xbf16>, vector<4x128xbf16>, vector<4x128xbf16> -> vector<36x128xbf16>
    %cst_105 = arith.constant dense<0.000000e+00> : vector<8x128xf32>
    %61 = tpu.matmul %0, %60, %cst_105 {dimension_numbers = #tpu.dot_dimension_numbers<[1], [0], [0], [1], [0, 0, 1, 1], [], []>} : vector<8x36xbf16>, vector<36x128xbf16>, vector<8x128xf32> -> vector<8x128xf32>
    %62 = arith.maximumf %41, %61 : vector<8x128xf32>
    %c0_106 = arith.constant 0 : index
    %c3_107 = arith.constant 3 : index
    %c0_108 = arith.constant 0 : index
    %c0_109 = arith.constant 0 : index
    %63 = vector.load %arg1[%c0_106, %c3_107, %c0_108, %c0_109] : memref<1x4x4x144xbf16, #tpu.memory_space<vmem>>, vector<1x1x4x128xbf16>
    %64 = vector.shape_cast %63 : vector<1x1x4x128xbf16> to vector<4x128xbf16>
    %c0_110 = arith.constant 0 : index
    %c2_111 = arith.constant 2 : index
    %c0_112 = arith.constant 0 : index
    %c1_113 = arith.constant 1 : index
    %65 = vector.load %arg1[%c0_110, %c2_111, %c0_112, %c1_113] : memref<1x4x4x144xbf16, #tpu.memory_space<vmem>>, vector<1x1x4x128xbf16>
    %66 = vector.shape_cast %65 : vector<1x1x4x128xbf16> to vector<4x128xbf16>
    %c0_114 = arith.constant 0 : index
    %c3_115 = arith.constant 3 : index
    %c0_116 = arith.constant 0 : index
    %c1_117 = arith.constant 1 : index
    %67 = vector.load %arg1[%c0_114, %c3_115, %c0_116, %c1_117] : memref<1x4x4x144xbf16, #tpu.memory_space<vmem>>, vector<1x1x4x128xbf16>
    %68 = vector.shape_cast %67 : vector<1x1x4x128xbf16> to vector<4x128xbf16>
    %c0_118 = arith.constant 0 : index
    %c1_119 = arith.constant 1 : index
    %c0_120 = arith.constant 0 : index
    %c8_121 = arith.constant 8 : index
    %69 = vector.load %arg1[%c0_118, %c1_119, %c0_120, %c8_121] : memref<1x4x4x144xbf16, #tpu.memory_space<vmem>>, vector<1x1x4x128xbf16>
    %70 = vector.shape_cast %69 : vector<1x1x4x128xbf16> to vector<4x128xbf16>
    %c0_122 = arith.constant 0 : index
    %c0_123 = arith.constant 0 : index
    %c0_124 = arith.constant 0 : index
    %c9_125 = arith.constant 9 : index
    %71 = vector.load %arg1[%c0_122, %c0_123, %c0_124, %c9_125] : memref<1x4x4x144xbf16, #tpu.memory_space<vmem>>, vector<1x1x4x128xbf16>
    %72 = vector.shape_cast %71 : vector<1x1x4x128xbf16> to vector<4x128xbf16>
    %c0_126 = arith.constant 0 : index
    %c1_127 = arith.constant 1 : index
    %c0_128 = arith.constant 0 : index
    %c9_129 = arith.constant 9 : index
    %73 = vector.load %arg1[%c0_126, %c1_127, %c0_128, %c9_129] : memref<1x4x4x144xbf16, #tpu.memory_space<vmem>>, vector<1x1x4x128xbf16>
    %74 = vector.shape_cast %73 : vector<1x1x4x128xbf16> to vector<4x128xbf16>
    %c0_130 = arith.constant 0 : index
    %c3_131 = arith.constant 3 : index
    %c0_132 = arith.constant 0 : index
    %c8_133 = arith.constant 8 : index
    %75 = vector.load %arg1[%c0_130, %c3_131, %c0_132, %c8_133] : memref<1x4x4x144xbf16, #tpu.memory_space<vmem>>, vector<1x1x4x128xbf16>
    %76 = vector.shape_cast %75 : vector<1x1x4x128xbf16> to vector<4x128xbf16>
    %c0_134 = arith.constant 0 : index
    %c2_135 = arith.constant 2 : index
    %c0_136 = arith.constant 0 : index
    %c9_137 = arith.constant 9 : index
    %77 = vector.load %arg1[%c0_134, %c2_135, %c0_136, %c9_137] : memref<1x4x4x144xbf16, #tpu.memory_space<vmem>>, vector<1x1x4x128xbf16>
    %78 = vector.shape_cast %77 : vector<1x1x4x128xbf16> to vector<4x128xbf16>
    %c0_138 = arith.constant 0 : index
    %c3_139 = arith.constant 3 : index
    %c0_140 = arith.constant 0 : index
    %c9_141 = arith.constant 9 : index
    %79 = vector.load %arg1[%c0_138, %c3_139, %c0_140, %c9_141] : memref<1x4x4x144xbf16, #tpu.memory_space<vmem>>, vector<1x1x4x128xbf16>
    %80 = vector.shape_cast %79 : vector<1x1x4x128xbf16> to vector<4x128xbf16>
    %81 = tpu.concatenate %64, %66, %68, %70, %72, %74, %76, %78, %80 in 0 : vector<4x128xbf16>, vector<4x128xbf16>, vector<4x128xbf16>, vector<4x128xbf16>, vector<4x128xbf16>, vector<4x128xbf16>, vector<4x128xbf16>, vector<4x128xbf16>, vector<4x128xbf16> -> vector<36x128xbf16>
    %cst_142 = arith.constant dense<0.000000e+00> : vector<8x128xf32>
    %82 = tpu.matmul %0, %81, %cst_142 {dimension_numbers = #tpu.dot_dimension_numbers<[1], [0], [0], [1], [0, 0, 1, 1], [], []>} : vector<8x36xbf16>, vector<36x128xbf16>, vector<8x128xf32> -> vector<8x128xf32>
    %83 = arith.maximumf %62, %82 : vector<8x128xf32>
    %c0_143 = arith.constant 0 : index
    %c0_144 = arith.constant 0 : index
    %84 = vector.load %arg3[%c0_143, %c0_144] : memref<8x1xf32, #tpu.memory_space<vmem>>, vector<8x1xf32>
    %85 = vector.broadcast %84 : vector<8x1xf32> to vector<8x128xf32>
    %86 = arith.addf %83, %85 : vector<8x128xf32>
    %c0_145 = arith.constant 0 : index
    %c0_146 = arith.constant 0 : index
    %c0_147 = arith.constant 0 : index
    %87 = vector.load %arg4[%c0_145, %c0_146, %c0_147] : memref<1x8x128xf32, #tpu.memory_space<vmem>>, vector<1x8x128xf32>
    %88 = vector.shape_cast %87 : vector<1x8x128xf32> to vector<8x128xf32>
    %89 = vector.shape_cast %86 : vector<8x128xf32> to vector<1x8x128xf32>
    tpu.vector_store %arg4[%c0_145, %c0_146, %c0_147], %89 {strides = array<i32>} : memref<1x8x128xf32, #tpu.memory_space<vmem>>, vector<1x8x128xf32>,
    return
  }
  func.func @transform_0(%arg0: i32) -> (i32, i32, i32, i32) {
    %c0_i32 = arith.constant 0 : i32
    %c0_i32_0 = arith.constant 0 : i32
    %c0_i32_1 = arith.constant 0 : i32
    %c0_i32_2 = arith.constant 0 : i32
    return %arg0, %c0_i32, %c0_i32_0, %c0_i32_1 : i32, i32, i32, i32
  }
  func.func @transform_1(%arg0: i32) -> (i32, i32) {
    %c0_i32 = arith.constant 0 : i32
    %c0_i32_0 = arith.constant 0 : i32
    %c0_i32_1 = arith.constant 0 : i32
    return %c0_i32, %c0_i32_0 : i32, i32
  }
  func.func @transform_2(%arg0: i32) -> (i32, i32) {
    %c0_i32 = arith.constant 0 : i32
    %c0_i32_0 = arith.constant 0 : i32
    %c0_i32_1 = arith.constant 0 : i32
    return %c0_i32, %c0_i32_0 : i32, i32
  }
  func.func @transform_3(%arg0: i32) -> (i32, i32, i32) {
    %c0_i32 = arith.constant 0 : i32
    %c0_i32_0 = arith.constant 0 : i32
    %c0_i32_1 = arith.constant 0 : i32
    return %arg0, %c0_i32, %c0_i32_0 : i32, i32, i32
  }
}

</mosaic_0001>

<bundles_post_ra>
// kernel: tpu_custom_call.1
= control target key start
LH: loop header
LB: loop body
LE: loop exit
PB: predicated region body
PF: predicated region fallthrough
CT: control target
= control target key end

     0   :  { %8 = vsyncpa [#allocation3], 0  ;;  %s1298_s0 = inlined_call_operand.hbm [shape: bf16[2,4,4,144], index: 0, kind: input, shape index: {}]   ;;  %s1299_s1 = inlined_call_operand.vmem [shape: bf16[8,36], index: 1, kind: input, shape index: {}]   ;;  %s1300_s2 = inlined_call_operand.vmem [shape: f32[8,1], index: 2, kind: input, shape index: {}]   ;;  %s1301_s3 = inlined_call_operand.hbm [shape: f32[2,8,128], index: 3, kind: output, shape index: {}]  }
   0x1   :  { %10 = vsyncpa [#allocation3 + $0x1], 0 }
   0x2   :  { %11 = vsyncpa [#allocation4], 0 }
   0x3   :  { %13 = vsyncpa [#allocation4 + $0x1], 0  ;;  %s953_s12 = smov 0   ;;  %s955_s13 = smov 0  }
   0x4   :  { %s957_s14 = smov 0   ;;  %s959_s15 = smov 0  }
   0x5 LB: > { %s974_s16 = sadd.s32 4294967295, %s925_s15   ;;  %s748_s17 = sadd.s32 4294967294, %s925_s15   ;;  %s925_s15 = sphi %s959_s15, %s1311_s15   ;;  %s921_s14 = sphi %s957_s14, %s1310_s14   ;;  %s917_s13 = sphi %s955_s13, %s1309_s13   ;;  %s913_s12 = sphi %s953_s12, %s1308_s12  }
   0x6   : > { %s978_s18 = sadd.s32 1, %s925_s15   ;;  %s26_s19 = sadd.s32 1, %s921_s14 }
   0x7   : > { %s23_s20 = ssub.s32 %s925_s15, %s978_s18  ;;  %p33_p0 = scmp.ne.s32.totalorder %s921_s14, %s917_s13 }
   0x8   : > { %p24_p1 = scmp.eq.s32.totalorder %s23_s20, 0  ;;  %p34_p2 = scmp.eq.s32.totalorder %s925_s15, 0 }
   0x9   : > { %p39_p3 = scmp.ne.s32.totalorder %s917_s13, %s913_s12  ;;  %p40_p4 = scmp.eq.s32.totalorder %s974_s16, 0 }
   0xa   : > { %s990_s21 = scalar_select %p24_p1, %s921_s14, %s26_s19  }
   0xb   : > { %p992_p5 = por %p34_p2, %p33_p0  ;;  %p996_p6 = por %p40_p4, %p39_p3 }
   0xc   : > { %p105_p7 = scmp.eq.s32.totalorder %s974_s16, 1  ;;  %p111_p8 = scmp.eq.s32.totalorder %s748_s17, 1 }
   0xd   : > { %p788_p10 = scmp.lt.s32.totalorder %s925_s15, 2  ;;  %s137_s26 = sand.u32 1, %s921_s14  }
   0xe   : > { %p1003_p11 = por %p105_p7, %p33_p0  ;;  %p1007_p12 = por %p111_p8, %p39_p3 }
   0xf   : > { %s775_s27 = sshll.u32 %s925_s15, 4  ;;  %s751_s28 = sshll.u32 %s137_s26, 4 }
  0x10   : > { %s146_s4 = scalar_lea.hbm %s1298_s0, %s775_s27  ;;  %s141_s6 = scalar_lea.vmem [#allocation2], %s751_s28 }
  0x11   : > { %s147_s5 = sshll.u32 %s146_s4, 4  ;;  %s149_s7 = sshll.u32 %s141_s6, 4  ;;  %s148_s5 = int_to_ptr.hbm [resolvable:$true] %s147_s5  ;;  %s150_s7 = int_to_ptr.vmem [resolvable:$true] %s149_s7 }
  0x12   : > { %p1018_p13 = pnand %p788_p10, %p992_p5  ;;  %p754_p0 = scmp.ge.s32.totalorder %s925_s15, 1 }
  0x13   : > { %p157_p1 = scmp.lt.s32.totalorder %s925_s15, 3  ;;  %s138_s9 = scalar_lea.sflag [#allocation3], %s137_s26 }
  0x14   : > { %s829_s10 = sshra.s32 %s148_s5, 4  ;;  %p833_p3 = pneg %p1018_p13  ;;  %s830_s10 = int_to_ptr.hbm [resolvable:$true] %s829_s10 }
  0x15   : > { %s831_s11 = scalar_lea.hbm %s830_s10, 16  ;;  %s836_s20 = scalar_lea.hbm %s1298_s0, 32 }
  0x16   : > { %p832_p2 = scmp.ne.s32.totalorder %s830_s10, %s831_s11  ;;  %p837_p5 = scmp.lt.s32.totalorder %s830_s10, %s1298_s0 }
  0x17   : > { %p838_p8 = scmp.lt.s32.totalorder %s836_s20, %s831_s11 }
  0x18   : > { %p834_p4 = pnand %p833_p3, %p832_p2 }
  0x19   : > { %p839_p10 = por %p838_p8, %p837_p5 }
  0x1a   : > { %p835_p7 = pneg %p834_p4 }
  0x1c   : > { %p840_p9 = pnand %p839_p10, %p835_p7 }
  0x1e   : > { %843 = shalt.err (!%p840_p9)
}
  0x1f   : > { %s927_s26 = smov 64   ;;  %s928_s28 = smov 4  }
  0x20   : > { %783 = dma.hbm_to_vmem [thread:$0]  (!%p1018_p13), %s148_s5, 256, %s150_s7, %s138_s9, %s927_s26, %s927_s26, %s928_s28  }
  0x21   : > { %p158_p2 = pnand %p754_p0, %p157_p1 }
  0x22   : > { %s1039_s29 = sand.u32 (!%p158_p2), 1, %s917_s13  }
  0x23   : > { %161 = sbr.rel (%p158_p2) target bundleno = 572 (0x23c), region = 32  ;;  %s755_s30 = sshll.u32 (!%p158_p2), %s1039_s29, 4 }
  0x24   : > { %s164_s4 = scalar_lea.sflag (!%p158_p2), [#allocation3], %s1039_s29  ;;  %s1043_s6 = scalar_lea.vmem (!%p158_p2), [#allocation2], %s755_s30 }
  0x28   : > { %904 = dma.done.wait (%p996_p6), %s164_s4, 256  }
  0x29   : > { %906 = vsyncadd (%p996_p6), %s164_s4, 4294967040  ;;  %v1050_v0 = vld [vmem:[%s1043_s6 + $0x4] sm:$0x3]  ;;  %v1054_v1 = vld [vmem:[%s1043_s6] sm:$0xf]  ;;  %s929_s23 = smov 127  }
  0x2a   : > { %205 = vst [vmem:[#allocation1 + $0x1] ss:$4 sm:$0xff] %v1050_v0  ;;  %v1060_v3 = vld [vmem:[%s1043_s6 + $0x8] sm:$0x3]  ;;  %v1077_v10 = vld [vmem:[%s1043_s6 + $0x4] sm:$0xf] }
  0x2b   : > { %v1068_v6 = vld [vmem:[%s1043_s6 + $0x8] sm:$0xf]  ;;  %s930_s5 = smov 120   ;;  %s931_s7 = smov 119   ;;  %v1089_v17 = vld [vmem:[%s1043_s6 + $0x4] sm:$0xf] }
  0x2c   : > { %v1096_v20 = vld [vmem:[%s1043_s6 + $0xc] sm:$0x3]  ;;  %v1136_v42 = vld [vmem:[%s1043_s6 + $0x8] sm:$0xf]  ;;  %vm218_vm0 = vcmask 1039360   ;;  %vm246_vm1 = vcmask 982016  }
  0x2d   : > { %v1107_v24 = vld [vmem:[%s1043_s6 + $0xc] sm:$0xf]  ;;  %vm271_vm2 = vcmask 1041408   ;;  %vm269_vm3 = vcmask 973824   ;;  %vm274_vm4 = vcmask 1043456   ;;  %vm277_vm5 = vcmask 1045504  }
  0x2e   : > { %v1143_v45 = vld [vmem:[%s1043_s6 + $0xc] sm:$0xf]  ;;  %vm288_vm6 = vcmask 293888   ;;  %s756_s17 = sshll.u32 %s1039_s29, 3  ;;  %s772_s19 = sshll.u32 %s974_s16, 3 }
  0x2f   : > { %s673_s27 = scalar_lea.hbm %s1301_s3, %s772_s19  ;;  %s190_s26 = scalar_lea.vmem [#allocation5], %s756_s17 }
  0x30   : > { %s675_s28 = sshll.u32 %s190_s26, 4  ;;  %s677_s30 = sshll.u32 %s673_s27, 4  ;;  %s676_s28 = int_to_ptr.vmem [resolvable:$true] %s675_s28  ;;  %s678_s30 = int_to_ptr.hbm [resolvable:$true] %s677_s30 }
  0x31   : > { %v1056_v2 = vld.sshfl [vmem:[#allocation1] sm:$0xff pattern:$0x73625140]  ;;  %s663_s16 = scalar_lea.sflag [#allocation4], %s1039_s29  ;;  %s873_s4 = sshra.s32 %s678_s30, 4  ;;  %s874_s4 = int_to_ptr.hbm [resolvable:$true] %s873_s4 }
  0x32   : > { %209 = vst [vmem:[#allocation1 + $0x2] ss:$4 sm:$0xff] %v1054_v1  ;;  %p880_p0 = scmp.lt.s32.totalorder %s874_s4, %s1301_s3 }
  0x39   : > { %v1062_v4 = vld.sshfl [vmem:[#allocation1] sm:$0xff pattern:$0x73625140]  ;;  %v1064_v5 = vld.sshfl [vmem:[#allocation1 + $0x8] sm:$0xff pattern:$0x73625140] }
  0x3a   : > { %222 = vst [vmem:[#allocation1 + $0x3] ss:$4 sm:$0xff] %v1060_v3 }
  0x41   : > { %v1070_v7 = vld.sshfl [vmem:[#allocation1] sm:$0xff pattern:$0x73625140] }
  0x42   : > { %226 = vst [vmem:[#allocation1 + $0x1] ss:$4 sm:$0xff] %v1068_v6 }
  0x49   : > { %v227_v8 = vld.sshfl [vmem:[#allocation1] sm:$0xff pattern:$0x73625140]  ;;  %v229_v9 = vld.sshfl [vmem:[#allocation1 + $0x8] sm:$0xff pattern:$0x73625140] }
  0x4a   : > { %231 = vrot.lane.b32.xlu0 %v227_v8, %s929_s23  ;;  %237 = vst [vmem:[#allocation1 + $0x2] ss:$4 sm:$0xff] %v1054_v1  ;;  %233 = vrot.lane.b32.xlu1 %v229_v9, %s929_s23 }
  0x51   : > { %v240_v11 = vld.sshfl [vmem:[#allocation1 + $0x8] sm:$0xff pattern:$0x73625140]  ;;  %v238_v12 = vld.sshfl [vmem:[#allocation1] sm:$0xff pattern:$0x73625140] }
  0x52   : > { %244 = vrot.lane.b32.xlu0 %v240_v11, %s930_s5  ;;  %250 = vst [vmem:[#allocation1 + $0x3] ss:$4 sm:$0xff] %v1077_v10  ;;  %242 = vrot.lane.b32.xlu2 %v238_v12, %s930_s5 }
  0x59   : > { %v251_v13 = vld.sshfl [vmem:[#allocation1] sm:$0xff pattern:$0x73625140]  ;;  %v253_v14 = vld.sshfl [vmem:[#allocation1 + $0x8] sm:$0xff pattern:$0x73625140] }
  0x5a   : > { %260 = vst [vmem:[#allocation1] ss:$4 sm:$0xff] %v1054_v1  ;;  %255 = vrot.lane.b32.xlu1 %v251_v13, %s930_s5  ;;  %257 = vrot.lane.b32.xlu2 %v253_v14, %s930_s5 }
  0x61   : > { %v261_v15 = vld.sshfl [vmem:[#allocation1] sm:$0xff pattern:$0x73625140]  ;;  %v263_v16 = vld.sshfl [vmem:[#allocation1 + $0x8] sm:$0xff pattern:$0x73625140] }
  0x62   : > { %311 = vst [vmem:[#allocation1 + $0x1] ss:$4 sm:$0xff] %v1054_v1  ;;  %265 = vrot.lane.b32.xlu1 %v261_v15, %s931_s7  ;;  %267 = vrot.lane.b32.xlu2 %v263_v16, %s931_s7 }
  0x69   : > { %v312_v18 = vld.sshfl [vmem:[#allocation1] sm:$0xff pattern:$0x73625140]  ;;  %v1091_v19 = vld.sshfl [vmem:[#allocation1 + $0x8] sm:$0xff pattern:$0x73625140] }
  0x6a   : > { %316 = vrot.lane.b32.xlu0 %v312_v18, %s929_s23  ;;  %323 = vst [vmem:[#allocation1 + $0x2] ss:$4 sm:$0xff] %v1089_v17 }
  0x71   : > { %v1098_v21 = vld.sshfl [vmem:[#allocation1] sm:$0xff pattern:$0x73625140]  ;;  %v1100_v22 = vld.sshfl [vmem:[#allocation1 + $0x8] sm:$0xff pattern:$0x73625140] }
  0x72   : > { %334 = vst [vmem:[#allocation1 + $0x3] ss:$4 sm:$0xff] %v1096_v20 }
  0x79   : > { %v1103_v23 = vld.sshfl [vmem:[#allocation1] sm:$0xff pattern:$0x73625140] }
  0x7a   : > { %336 = vst [vmem:[#allocation1] ss:$4 sm:$0xff] %v1068_v6 }
  0x81   : > { %v339_v25 = vld.sshfl [vmem:[#allocation1 + $0x8] sm:$0xff pattern:$0x73625140]  ;;  %v337_v26 = vld.sshfl [vmem:[#allocation1] sm:$0xff pattern:$0x73625140] }
  0x82   : > { %343 = vrot.lane.b32.xlu0 %v339_v25, %s929_s23  ;;  %348 = vst [vmem:[#allocation1 + $0x1] ss:$4 sm:$0xff] %v1107_v24  ;;  %341 = vrot.lane.b32.xlu2 %v337_v26, %s929_s23 }
  0x89   : > { %v349_v27 = vld.sshfl [vmem:[#allocation1] sm:$0xff pattern:$0x73625140]  ;;  %v351_v28 = vld.sshfl [vmem:[#allocation1 + $0x8] sm:$0xff pattern:$0x73625140] }
  0x8a   : > { %359 = vst [vmem:[#allocation1 + $0x2] ss:$4 sm:$0xff] %v1077_v10  ;;  %353 = vrot.lane.b32.xlu1 %v349_v27, %s929_s23  ;;  %355 = vrot.lane.b32.xlu2 %v351_v28, %s929_s23 }
  0x91   : > { %v360_v29 = vld.sshfl [vmem:[#allocation1] sm:$0xff pattern:$0x73625140]  ;;  %v362_v30 = vld.sshfl [vmem:[#allocation1 + $0x8] sm:$0xff pattern:$0x73625140] }
  0x92   : > { %370 = vst [vmem:[#allocation1 + $0x3] ss:$4 sm:$0xff] %v1054_v1  ;;  %364 = vrot.lane.b32.xlu1 %v360_v29, %s930_s5  ;;  %366 = vrot.lane.b32.xlu2 %v362_v30, %s930_s5 }
  0x99   : > { %v371_v31 = vld.sshfl [vmem:[#allocation1] sm:$0xff pattern:$0x73625140]  ;;  %v373_v32 = vld.sshfl [vmem:[#allocation1 + $0x8] sm:$0xff pattern:$0x73625140] }
  0x9a   : > { %380 = vst [vmem:[#allocation1] ss:$4 sm:$0xff] %v1089_v17  ;;  %375 = vrot.lane.b32.xlu0 %v371_v31, %s931_s7  ;;  %377 = vrot.lane.b32.xlu1 %v373_v32, %s931_s7 }
  0xa1   : > { %v383_v33 = vld.sshfl [vmem:[#allocation1 + $0x8] sm:$0xff pattern:$0x73625140]  ;;  %v381_v34 = vld.sshfl [vmem:[#allocation1] sm:$0xff pattern:$0x73625140] }
  0xa2   : > { %385 = vrot.lane.b32.xlu0 %v381_v34, %s931_s7  ;;  %424 = vst [vmem:[#allocation1 + $0x1] ss:$4 sm:$0xff] %v1096_v20  ;;  %387 = vrot.lane.b32.xlu1 %v383_v33, %s931_s7 }
  0xa9   : > { %v1124_v35 = vld.sshfl [vmem:[#allocation1] sm:$0xff pattern:$0x73625140] }
  0xaa   : > { %427 = vst [vmem:[#allocation1 + $0x2] ss:$4 sm:$0xff] %v1068_v6 }
  0xac   : > { %v243_v57 = vpop.permute.xlu2 %242 }
  0xb1   : > { %v428_v36 = vld.sshfl [vmem:[#allocation1] sm:$0xff pattern:$0x73625140]  ;;  %v430_v37 = vld.sshfl [vmem:[#allocation1 + $0x8] sm:$0xff pattern:$0x73625140] }
  0xb2   : > { %432 = vrot.lane.b32.xlu0 %v428_v36, %s929_s23  ;;  %438 = vst [vmem:[#allocation1 + $0x3] ss:$4 sm:$0xff] %v1054_v1  ;;  %434 = vrot.lane.b32.xlu1 %v430_v37, %s929_s23 }
  0xb4   : > { %v258_v62 = vpop.permute.xlu2 %257 }
  0xb9   : > { %v441_v38 = vld.sshfl [vmem:[#allocation1 + $0x8] sm:$0xff pattern:$0x73625140]  ;;  %v439_v39 = vld.sshfl [vmem:[#allocation1] sm:$0xff pattern:$0x73625140] }
  0xba   : > { %445 = vrot.lane.b32.xlu0 %v441_v38, %s930_s5  ;;  %448 = vst [vmem:[#allocation1] ss:$4 sm:$0xff] %v1077_v10  ;;  %443 = vrot.lane.b32.xlu2 %v439_v39, %s930_s5  ;;  %v769_v38 = vld [vmem:[%s1043_s6 + $0xc] sm:$0xf] }
  0xbc   : > { %v234_v50 = vpop.permute.xlu1 %233  ;;  %v232_v53 = vpop.permute.xlu0 %231 }
  0xbd   : > { %v268_v13 = vpop.permute.xlu2 %267 }
  0xc1   : > { %v449_v40 = vld.sshfl [vmem:[#allocation1] sm:$0xff pattern:$0x73625140]  ;;  %v451_v41 = vld.sshfl [vmem:[#allocation1 + $0x8] sm:$0xff pattern:$0x73625140] }
  0xc2   : > { %459 = vst [vmem:[#allocation1 + $0x1] ss:$4 sm:$0xff] %v1054_v1  ;;  %453 = vrot.lane.b32.xlu2 %v449_v40, %s930_s5 }
  0xc4   : > { %v245_v60 = vpop.permute.xlu0 %244 }
  0xc5   : > { %v247_v12 = vsel %vm246_vm1, %v243_v57, %v245_v60 }
  0xc9   : > { %v460_v43 = vld.sshfl [vmem:[#allocation1] sm:$0xff pattern:$0x73625140]  ;;  %v462_v44 = vld.sshfl [vmem:[#allocation1 + $0x8] sm:$0xff pattern:$0x73625140] }
  0xca   : > { %464 = vrot.lane.b32.xlu0 %v460_v43, %s931_s7  ;;  %471 = vst [vmem:[#allocation1 + $0x2] ss:$4 sm:$0xff] %v1136_v42  ;;  %466 = vrot.lane.b32.xlu1 %v462_v44, %s931_s7 }
  0xcb   : > { %455 = vrot.lane.b32.xlu2 %v451_v41, %s930_s5 }
  0xcc   : > { %v256_v54 = vpop.permute.xlu1 %255 }
  0xd1   : > { %v472_v46 = vld.sshfl [vmem:[#allocation1] sm:$0xff pattern:$0x73625140]  ;;  %v474_v47 = vld.sshfl [vmem:[#allocation1 + $0x8] sm:$0xff pattern:$0x73625140] }
  0xd2   : > { %476 = vrot.lane.b32.xlu0 %v472_v46, %s930_s5  ;;  %483 = vst [vmem:[#allocation1 + $0x3] ss:$4 sm:$0xff] %v1143_v45  ;;  %478 = vrot.lane.b32.xlu1 %v474_v47, %s930_s5 }
  0xd4   : > { %v266_v61 = vpop.permute.xlu1 %265 }
  0xd5   : > { %v270_v16 = vsel %vm269_vm3, %v266_v61, %v268_v13 }
  0xd9   : > { %v486_v48 = vld.sshfl [vmem:[#allocation1 + $0x8] sm:$0xff pattern:$0x73625140]  ;;  %v484_v49 = vld.sshfl [vmem:[#allocation1] sm:$0xff pattern:$0x73625140] }
  0xda   : > { %490 = vrot.lane.b32.xlu0 %v486_v48, %s930_s5  ;;  %493 = vst [vmem:[#allocation1] ss:$4 sm:$0xff] %v1136_v42  ;;  %488 = vrot.lane.b32.xlu2 %v484_v49, %s930_s5 }
  0xdc   : > { %v1163_v8 = vpop.permute.xlu0 %316  ;;  %v342_v29 = vpop.permute.xlu2 %341 }
  0xe1   : > { %v494_v51 = vld.sshfl [vmem:[#allocation1] sm:$0xff pattern:$0x73625140]  ;;  %v496_v52 = vld.sshfl [vmem:[#allocation1 + $0x8] sm:$0xff pattern:$0x73625140] }
  0xe2   : > { %498 = vrot.lane.b32.xlu0 %v494_v51, %s931_s7  ;;  %536 = vst [vmem:[#allocation1 + $0x1] ss:$4 sm:$0xff] %v1068_v6 }
  0xe4   : > { %v356_v34 = vpop.permute.xlu2 %355 }
  0xe9   : > { %v537_v55 = vld.sshfl [vmem:[#allocation1] sm:$0xff pattern:$0x73625140]  ;;  %v539_v56 = vld.sshfl [vmem:[#allocation1 + $0x8] sm:$0xff pattern:$0x73625140] }
  0xea   : > { %500 = vrot.lane.b32.xlu0 %v496_v52, %s931_s7  ;;  %543 = vrot.lane.b32.xlu1 %v539_v56, %s929_s23  ;;  %547 = vst [vmem:[#allocation1 + $0x2] ss:$4 sm:$0xff] %v1107_v24  ;;  %v293_v24 = vsel %vm271_vm2, %v270_v16, 0  ;;  %v503_v16 = vsel %vm271_vm2, %v1060_v3, %v1124_v35 }
  0xeb   : > { %300 = vmatpush.bf16.msra.mxu0 %v293_v24 }
  0xf1   : > { %v550_v58 = vld.sshfl [vmem:[#allocation1 + $0x8] sm:$0xff pattern:$0x73625140]  ;;  %v548_v59 = vld.sshfl [vmem:[#allocation1] sm:$0xff pattern:$0x73625140] }
  0xf2   : > { %541 = vrot.lane.b32.xlu0 %v537_v55, %s929_s23  ;;  %558 = vst [vmem:[#allocation1 + $0x3] ss:$4 sm:$0xff] %v1077_v10  ;;  %552 = vrot.lane.b32.xlu2 %v548_v59, %s929_s23  ;;  %v235_v10 = vsel %vm218_vm0, %v232_v53, %v234_v50 }
  0xf3   : > { %v282_v11 = vsel %vm271_vm2, %v1096_v20, %v235_v10 }
  0xf4   : > { %v284_v18 = vsel %vm274_vm4, %v282_v11, %v247_v12  ;;  %v344_v26 = vpop.permute.xlu0 %343 }
  0xf5   : > { %v345_v36 = vsel %vm218_vm0, %v342_v29, %v344_v26 }
  0xf9   : > { %v559_v63 = vld.sshfl [vmem:[#allocation1] sm:$0xff pattern:$0x73625140]  ;;  %v561_v6 = vld.sshfl [vmem:[#allocation1 + $0x8] sm:$0xff pattern:$0x73625140] }
  0xfa   : > { %554 = vrot.lane.b32.xlu0 %v550_v58, %s929_s23  ;;  %563 = vrot.lane.b32.xlu1 %v559_v63, %s930_s5  ;;  %568 = vst [vmem:[#allocation1] ss:$4 sm:$0xff] %v1054_v1  ;;  %v259_v1 = vsel %vm246_vm1, %v256_v54, %v258_v62 }
  0xfb   : > { %565 = vrot.lane.b32.xlu2 %v561_v6, %s930_s5  ;;  %v286_v27 = vsel %vm277_vm5, %v284_v18, %v259_v1 }
  0xfc   : > { %v354_v9 = vpop.permute.xlu1 %353  ;;  %301 = vmatpush.bf16.msra.mxu0 %v286_v27 }
  0xfd   : > { %v357_v37 = vsel %vm218_vm0, %v354_v9, %v356_v34 }
  0xfe   : > { %v398_v43 = vsel %vm271_vm2, %v345_v36, %v357_v37 }
 0x101   : > { %v571_v14 = vld.sshfl [vmem:[#allocation1 + $0x8] sm:$0xff pattern:$0x73625140]  ;;  %v569_v15 = vld.sshfl [vmem:[#allocation1] sm:$0xff pattern:$0x73625140] }
 0x102   : > { %575 = vrot.lane.b32.xlu0 %v571_v14, %s931_s7  ;;  %579 = vst [vmem:[#allocation1 + $0x1] ss:$4 sm:$0xff] %v1089_v17 }
 0x103   : > { %573 = vrot.lane.b32.xlu2 %v569_v15, %s931_s7 }
 0x104   : > { %v365_v25 = vpop.permute.xlu1 %364 }
 0x109   : > { %v580_v28 = vld.sshfl [vmem:[#allocation1] sm:$0xff pattern:$0x73625140]  ;;  %v582_v17 = vld.sshfl [vmem:[#allocation1 + $0x8] sm:$0xff pattern:$0x73625140] }
 0x10a   : > { %584 = vrot.lane.b32.xlu1 %v580_v28, %s931_s7  ;;  %590 = vst [vmem:[#allocation1 + $0x2] ss:$4 sm:$0xff] %v1143_v45 }
 0x10b   : > { %586 = vrot.lane.b32.xlu2 %v582_v17, %s931_s7 }
 0x10c   : > { %v378_v30 = vpop.permute.xlu1 %377  ;;  %v376_v31 = vpop.permute.xlu0 %375 }
 0x10d   : > { %v379_v45 = vsel %vm269_vm3, %v376_v31, %v378_v30 }
 0x111   : > { %v593_v32 = vld.sshfl [vmem:[#allocation1 + $0x8] sm:$0xff pattern:$0x73625140]  ;;  %v591_v33 = vld.sshfl [vmem:[#allocation1] sm:$0xff pattern:$0x73625140] }
 0x112   : > { %597 = vrot.lane.b32.xlu0 %v593_v32, %s930_s5  ;;  %601 = vst [vmem:[#allocation1 + $0x3] ss:$4 sm:$0xff] %v1136_v42  ;;  %v367_v42 = vpop.permute.xlu2 %366 }
 0x113   : > { %595 = vrot.lane.b32.xlu2 %v591_v33, %s930_s5  ;;  %v368_v46 = vsel %vm246_vm1, %v365_v25, %v367_v42 }
 0x114   : > { %v388_v39 = vpop.permute.xlu1 %387  ;;  %v386_v44 = vpop.permute.xlu0 %385  ;;  %v400_v49 = vsel %vm274_vm4, %v398_v43, %v368_v46  ;;  %v193_v43 = vld [vmem:[%s1043_s6] sm:$0x3]  ;;  %s875_s6 = scalar_lea.hbm %s874_s4, 8 }
 0x115   : > { %v389_v47 = vsel %vm269_vm3, %v386_v44, %v388_v39  ;;  %v402_v50 = vsel %vm277_vm5, %v400_v49, %v379_v45  ;;  %v273_v42 = vsel %vm271_vm2, %v193_v43, %v1056_v2  ;;  %p876_p6 = scmp.ne.s32.totalorder %s874_s4, %s875_s6 }
 0x116   : > { %v405_v48 = vsel %vm271_vm2, %v389_v47, 0 }
 0x117   : > { %412 = vmatpush.bf16.msra.mxu1 %v405_v48  ;;  %p877_p9 = pnand %p876_p6, %p1003_p11 }
 0x119   : > { %v602_v40 = vld.sshfl [vmem:[#allocation1] sm:$0xff pattern:$0x73625140]  ;;  %v604_v41 = vld.sshfl [vmem:[#allocation1 + $0x8] sm:$0xff pattern:$0x73625140]  ;;  %p878_p13 = pneg %p877_p9 }
 0x11a   : > { %606 = vrot.lane.b32.xlu1 %v602_v40, %s931_s7  ;;  %612 = vst [vmem:[#allocation1] ss:$4 sm:$0xff] %v769_v38  ;;  %216 = vrot.lane.b32.xlu0 %v1064_v5, %s929_s23  ;;  %v444_v53 = vpop.permute.xlu2 %443 }
 0x11b   : > { %608 = vrot.lane.b32.xlu2 %v604_v41, %s931_s7  ;;  %413 = vmatpush.bf16.msra.mxu1 %v402_v50  ;;  %v654_v50 = vld [vmem:[%s1300_s2] sm:$0xff] }
 0x121   : > { %v613_v51 = vld.sshfl [vmem:[#allocation1] sm:$0xff pattern:$0x73625140]  ;;  %v615_v5 = vld.sshfl [vmem:[#allocation1 + $0x8] sm:$0xff pattern:$0x73625140] }
 0x122   : > { %617 = vrot.lane.b32.xlu1 %v613_v51, %s931_s7  ;;  %v454_v55 = vpop.permute.xlu2 %453 }
 0x123   : > { %214 = vrot.lane.b32.xlu2 %v1062_v4, %s929_s23 }
 0x124   : > { %v433_v52 = vpop.permute.xlu0 %432  ;;  %v435_v4 = vpop.permute.xlu1 %434 }
 0x125   : > { %v436_v1 = vsel %vm218_vm0, %v433_v52, %v435_v4 }
 0x126   : > { %v505_v26 = vsel %vm274_vm4, %v503_v16, %v436_v1 }
 0x12a   : > { %619 = vrot.lane.b32.xlu1 %v615_v5, %s931_s7  ;;  %v456_v57 = vpop.permute.xlu2 %455  ;;  %v932_v5 = vmov 0   ;;  %s879_s7 = scalar_lea.hbm %s1301_s3, 16 }
 0x12b   : > { %330 = vrot.lane.b32.xlu2 %v1100_v22, %s929_s23  ;;  %v457_v6 = vsel %vm246_vm1, %v454_v55, %v456_v57  ;;  %828 = vset.pattern.permute.xlu0 %v932_v5  ;;  %p881_p1 = scmp.lt.s32.totalorder %s879_s7, %s875_s6 }
 0x12c   : > { %v446_v54 = vpop.permute.xlu0 %445  ;;  %657 = vperm.xlu0 %828, %v654_v50  }
 0x12d   : > { %v447_v25 = vsel %vm246_vm1, %v444_v53, %v446_v54  ;;  %p882_p3 = por %p881_p1, %p880_p0 }
 0x12e   : > { %v507_v17 = vsel %vm277_vm5, %v505_v26, %v447_v25 }
 0x12f   : > { %p883_p4 = pnand %p882_p3, %p878_p13 }
 0x132   : > { %318 = vrot.lane.b32.xlu1 %v1091_v19, %s929_s23 }
 0x134   : > { %v489_v59 = vpop.permute.xlu2 %488 }
 0x13a   : > { %328 = vrot.lane.b32.xlu1 %v1098_v21, %s929_s23 }
 0x13c   : > { %v465_v56 = vpop.permute.xlu0 %464  ;;  %v467_v61 = vpop.permute.xlu1 %466 }
 0x13d   : > { %v468_v22 = vsel %vm269_vm3, %v465_v56, %v467_v61 }
 0x13e   : > { %v511_v10 = vsel %vm271_vm2, %v457_v6, %v468_v22 }
 0x144   : > { %v477_v58 = vpop.permute.xlu0 %476  ;;  %v479_v9 = vpop.permute.xlu1 %478 }
 0x145   : > { %v480_v21 = vsel %vm246_vm1, %v477_v58, %v479_v9 }
 0x146   : > { %v513_v15 = vsel %vm274_vm4, %v511_v10, %v480_v21 }
 0x14c   : > { %v491_v60 = vpop.permute.xlu0 %490  ;;  %v553_v62 = vpop.permute.xlu2 %552 }
 0x14d   : > { %v492_v14 = vsel %vm246_vm1, %v489_v59, %v491_v60 }
 0x14e   : > { %v515_v18 = vsel %vm277_vm5, %v513_v15, %v492_v14 }
 0x154   : > { %v499_v63 = vpop.permute.xlu0 %498 }
 0x155   : > { %v566_v19 = vpop.permute.xlu2 %565 }
 0x15c   : > { %v501_v11 = vpop.permute.xlu0 %500  ;;  %v544_v24 = vpop.permute.xlu1 %543 }
 0x15d   : > { %v502_v12 = vsel %vm269_vm3, %v499_v63, %v501_v11  ;;  %v574_v28 = vpop.permute.xlu2 %573 }
 0x15e   : > { %v518_v13 = vsel %vm271_vm2, %v502_v12, 0 }
 0x15f   : > { %525 = vmatpush.bf16.msra.mxu2 %v518_v13 }
 0x163   : > { %526 = vmatpush.bf16.msra.mxu2 %v515_v18 }
 0x164   : > { %v542_v27 = vpop.permute.xlu0 %541 }
 0x165   : > { %v545_v29 = vsel %vm218_vm0, %v542_v27, %v544_v24  ;;  %v587_v33 = vpop.permute.xlu2 %586 }
 0x166   : > { %v623_v30 = vsel %vm271_vm2, %v1096_v20, %v545_v29  ;;  %v192_v20 = vld [vmem:[%s1299_s1] sm:$0xf] }
 0x167   : > { %527 = vmatpush.bf16.msra.mxu2 %v507_v17 }
 0x16a   : > { %768 = vmatmul.msk.bf16.vlgmr.msra.gmra.mxu2 %vm288_vm6, %v192_v20 }
 0x16c   : > { %v555_v3 = vpop.permute.xlu0 %554  ;;  %v564_v35 = vpop.permute.xlu1 %563 }
 0x16d   : > { %v556_v31 = vsel %vm218_vm0, %v553_v62, %v555_v3  ;;  %v567_v32 = vsel %vm246_vm1, %v564_v35, %v566_v19  ;;  %v596_v37 = vpop.permute.xlu2 %595 }
 0x16e   : > { %v625_v34 = vsel %vm274_vm4, %v623_v30, %v556_v31 }
 0x16f   : > { %v627_v36 = vsel %vm277_vm5, %v625_v34, %v567_v32 }
 0x174   : > { %v576_v38 = vpop.permute.xlu0 %575 }
 0x175   : > { %v609_v40 = vpop.permute.xlu2 %608  ;;  %v577_v2 = vsel %vm269_vm3, %v574_v28, %v576_v38 }
 0x17c   : > { %v585_v39 = vpop.permute.xlu1 %584 }
 0x17d   : > { %v215_v44 = vpop.permute.xlu2 %214  ;;  %v588_v52 = vsel %vm269_vm3, %v585_v39, %v587_v33 }
 0x184   : > { %v598_v41 = vpop.permute.xlu0 %597 }
 0x185   : > { %v599_v55 = vsel %vm246_vm1, %v596_v37, %v598_v41  ;;  %v331_v61 = vpop.permute.xlu2 %330 }
 0x18c   : > { %v607_v45 = vpop.permute.xlu1 %606  ;;  %v217_v46 = vpop.permute.xlu0 %216 }
 0x18d   : > { %v219_v47 = vsel %vm218_vm0, %v215_v44, %v217_v46  ;;  %v610_v57 = vsel %vm269_vm3, %v607_v45, %v609_v40 }
 0x18e   : > { %v276_v48 = vsel %vm274_vm4, %v273_v42, %v219_v47 }
 0x18f   : > { %v278_v49 = vsel %vm277_vm5, %v276_v48, %v1070_v7  ;;  %v631_v7 = vsel %vm271_vm2, %v577_v2, %v588_v52 }
 0x190   : > { %302 = vmatpush.bf16.msra.mxu0 %v278_v49  ;;  %v633_v58 = vsel %vm274_vm4, %v631_v7, %v599_v55 }
 0x191   : > { %v635_v4 = vsel %vm277_vm5, %v633_v58, %v610_v57 }
 0x193   : > { %762 = vmatmul.msk.bf16.vlgmr.msra.gmra.mxu0 %vm288_vm6, %v192_v20 }
 0x194   : > { %v618_v51 = vpop.permute.xlu1 %617 }
 0x19c   : > { %v620_v53 = vpop.permute.xlu1 %619 }
 0x19d   : > { %v621_v54 = vsel %vm269_vm3, %v618_v51, %v620_v53 }
 0x19e   : > { %v638_v56 = vsel %vm271_vm2, %v621_v54, 0  ;;  %v658_v14 = vpop.permute.xlu0 %657 }
 0x19f   : > { %645 = vmatpush.bf16.msra.mxu3 %v638_v56 }
 0x1a3   : > { %646 = vmatpush.bf16.msra.mxu3 %v635_v4 }
 0x1a4   : > { %v319_v59 = vpop.permute.xlu1 %318 }
 0x1a5   : > { %v320_v60 = vsel %vm218_vm0, %v1163_v8, %v319_v59 }
 0x1a6   : > { %v391_v63 = vsel %vm271_vm2, %v1050_v0, %v320_v60 }
 0x1a7   : > { %647 = vmatpush.bf16.msra.mxu3 %v627_v36 }
 0x1aa   : > { %770 = vmatmul.msk.bf16.vlgmr.msra.gmra.mxu3 %vm288_vm6, %v192_v20 }
 0x1ac   : > { %v329_v62 = vpop.permute.xlu1 %328 }
 0x1ad   : > { %v332_v6 = vsel %vm218_vm0, %v329_v62, %v331_v61 }
 0x1ae   : > { %v393_v22 = vsel %vm274_vm4, %v391_v63, %v332_v6 }
 0x1af   : > { %v394_v9 = vsel %vm277_vm5, %v393_v22, %v1103_v23 }
 0x1b0   : > { %414 = vmatpush.bf16.msra.mxu1 %v394_v9 }
 0x1b3   : > { %765 = vmatmul.msk.bf16.vlgmr.msra.gmra.mxu1 %vm288_vm6, %v192_v20 }
 0x1ed   : > { %v529_v19 = vpop.f32.mrf.mxu2 }
 0x1f5   : > { %v531_v10 = vpop.f32.mrf.mxu2 }
 0x210   : > { %v304_v8 = vpop.f32.mrf.mxu0 }
 0x218   : > { %v306_v11 = vpop.f32.mrf.mxu0 }
 0x22d   : > { %v649_v21 = vpop.f32.mrf.mxu3 }
 0x230   : > { %v416_v12 = vpop.f32.mrf.mxu1 }
 0x231   : > { %v420_v0 = vmax.f32 %v304_v8, %v416_v12 }
 0x233   : > { %v533_v13 = vmax.f32 %v420_v0, %v529_v19 }
 0x235   : > { %v651_v23 = vpop.f32.mrf.mxu3  ;;  %v653_v15 = vmax.f32 %v533_v13, %v649_v21 }
 0x237   : > { %v660_v1 = vadd.f32 %v658_v14, %v653_v15 }
 0x238   : > { %v418_v16 = vpop.f32.mrf.mxu1 }
 0x239   : > { %661 = vst [vmem:[%s190_s26] sm:$0xff] %v660_v1 }
 0x23a   : > { %886 = shalt.err (!%p883_p4)
}
 0x23b   : > { %778 = dma.vmem_to_hbm [thread:$0]  (%p1003_p11), %s676_s28, 128, %s678_s30, %s663_s16  }
 0x23c PF: > { %s689_s29 = sand.u32 1, %s913_s12   ;;  %p1307_p7 = scmp.ge.s32.totalorder %s925_s15, 2 }
 0x23d   : > { %s690_s10 = scalar_lea.sflag [#allocation4], %s689_s29 }
 0x23e   : > { %p785_p5 = pnand %p1307_p7, %p1007_p12 }
 0x240   : > { %p786_p8 = pneg %p785_p5 }
 0x242   : > { %908 = dma.done.wait (%p786_p8), %s690_s10, 128  }
 0x243   : > { %910 = vsyncadd (%p786_p8), %s690_s10, 4294967168  ;;  %p16_p10 = scmp.ge.s32.totalorder %s978_s18, 4   ;;  %s1308_s12 = smov %s917_s13 }
 0x244   : > { %s1309_s13 = smov %s921_s14  ;;  %s1310_s14 = smov %s990_s21 }
 0x245   : > { %s1311_s15 = smov %s978_s18  ;;  %18 = sbr.rel (!%p16_p10) target bundleno = 5 (0x5), region = 104 }
 0x24a   :  { %696 = vsyncpa [#allocation3], 1 }
 0x24b   :  { %698 = vsyncpa [#allocation3 + $0x1], 1 }
 0x24c   :  { %699 = vsyncpa [#allocation4], 1 }
 0x24d   :  { %701 = vsyncpa [#allocation4 + $0x1], 1 }

</bundles_post_ra>
